<compile_context>
chip_gen: v6e
topology: v6e:2x2x1
jax: 0.10.0
libtpu: 0.0.40
codegen_flags: <defaults>
</compile_context>

<pallas_src>
import functools

import jax
import jax.numpy as jnp
import numpy as np
from jax.experimental import pallas as pl
from jax.experimental.pallas import tpu as pltpu


_LANE_TILE_CAP = 16 * 1024   # samples (lanes) processed per grid step


def _risk_bce_kernel(pred_ref, label_ref, ylf_ref, w_ref, bce_ref, mask_ref, *,
                     batch, tile_b):
    """One batch tile, lane-dense (batch on lanes, years on sublanes).

    pred_ref  : (T, TB)  logits
    label_ref : (1, TB)  int32 event year
    ylf_ref   : (1, TB)  int32 years of last followup
    w_ref     : (T, 1)   f32 per-year weights
    bce_ref   : (1, TB)  f32 per-sample weighted BCE numerator (output)
    mask_ref  : (1, TB)  f32 per-sample weighted risk-mask sum  (output)
    """
    T, TB = pred_ref.shape
    followup = T - 1
    pid = pl.program_id(0)

    # ---- log-softmax pieces over the year axis (axis 0 = sublanes), in f32 ---
    x = pred_ref[...].astype(jnp.float32)                    # (T, TB)
    m = jnp.max(x, axis=0, keepdims=True)                    # (1, TB)
    z = x - m
    e = jnp.exp(z)                                           # EUP
    s = jnp.sum(e, axis=0, keepdims=True)                    # XLU sublane reduce
    log_s = jnp.log(s)                                       # EUP

    # ---- labels / censoring ---------------------------------------------------
    label = jnp.minimum(label_ref[...], followup)            # clamp past-horizon labels
    ylf = ylf_ref[...]                                        # (1, TB)
    year = jax.lax.broadcasted_iota(jnp.int32, (T, TB), 0)   # year index per element
    lane = jax.lax.broadcasted_iota(jnp.int32, (1, TB), 1)   # sample index within tile

    # Fused select + clamp (identical to clamp(log p) / clamp(log(1-p))):
    #   event year : max(z - log s, -100)        == max(log softmax, -100)
    #   other years: max(log(s-e) - log s, -100) == max(log(1 - softmax), -100)
    chosen = jnp.maximum(
        jnp.where(year == label, z, jnp.log(s - e)) - log_s, -100.0)   # (T, TB)

    # keep = lane is a real sample AND year not censored out.
    censored = jnp.logical_and(label == followup, ylf < followup)      # (1, TB)
    valid = (pid * tile_b + lane) < batch                              # ragged last tile
    keep = jnp.logical_and(
        valid, jnp.logical_or(jnp.logical_not(censored), year <= ylf))  # (T, TB)

    # Weighted reductions over the year axis only -> lane-dense per-sample
    # partials.  `where` (select) happens BEFORE the reduce so garbage in the
    # ragged last block contributes exactly zero (never NaN * 0).
    w = w_ref[...]                                                     # (T, 1)
    bce_ref[...] = -jnp.sum(jnp.where(keep, chosen * w, 0.0),
                            axis=0, keepdims=True)                     # (1, TB)
    mask_ref[...] = jnp.sum(jnp.where(keep, w, 0.0),
                            axis=0, keepdims=True)                     # (1, TB)


def risk_bce_loss(pred, risk_label, years_last_followup, weights=None,
                  weight_loss=2.0, tile_lanes=_LANE_TILE_CAP):
    """pred: (B, T) float (f32 or bf16); risk_label, years_last_followup: (B,) int."""
    B, T = pred.shape

    if B <= tile_lanes:
        tile_b = B                       # single tile, block == full array dims
        num_tiles = 1
    else:
        assert tile_lanes % 128 == 0, "tile_lanes must be a multiple of 128"
        tile_b = tile_lanes
        num_tiles = pl.cdiv(B, tile_b)   # ragged last tile handled by `valid` mask
    bp = num_tiles * tile_b              # padded width of the per-sample outputs

    # One transpose pass puts the batch on the 128-lane axis.  No explicit pad
    # of the big logits array; labels/followup are reshaped (free).
    pred_t = jnp.swapaxes(pred, 0, 1)                              # (T, B)
    label2d = risk_label.astype(jnp.int32).reshape(1, B)           # (1, B)
    ylf2d = years_last_followup.astype(jnp.int32).reshape(1, B)    # (1, B)
    if weights is None:
        w2d = jnp.ones((T, 1), dtype=jnp.float32)
    else:
        w2d = jnp.asarray(weights, dtype=jnp.float32).reshape(T, 1)

    kernel = functools.partial(_risk_bce_kernel, batch=B, tile_b=tile_b)
    itemsize = jnp.dtype(pred.dtype).itemsize

    bce_parts, mask_parts = pl.pallas_call(
        kernel,
        out_shape=(jax.ShapeDtypeStruct((1, bp), jnp.float32),
                   jax.ShapeDtypeStruct((1, bp), jnp.float32)),
        grid=(num_tiles,),
        in_specs=[
            pl.BlockSpec((T, tile_b), lambda i: (0, i)),   # logits (T, B)
            pl.BlockSpec((1, tile_b), lambda i: (0, i)),   # risk_label (1, B)
            pl.BlockSpec((1, tile_b), lambda i: (0, i)),   # years_last_followup (1, B)
            pl.BlockSpec((T, 1), lambda i: (0, 0)),        # per-year weights (T, 1)
        ],
        out_specs=(pl.BlockSpec((1, tile_b), lambda i: (0, i)),
                   pl.BlockSpec((1, tile_b), lambda i: (0, i))),
        compiler_params=pltpu.CompilerParams(
            dimension_semantics=("parallel",),
            vmem_limit_bytes=32 * 1024 * 1024),
        cost_estimate=pl.CostEstimate(
            flops=16 * B * T,
            transcendentals=2 * B * T + 2 * B,
            bytes_accessed=B * T * itemsize + 2 * B * 4 + T * 4 + 2 * bp * 4),
    )(pred_t, label2d, ylf2d, w2d)

    sum_bce = jnp.sum(bce_parts)      # padded lanes wrote exact zeros
    sum_mask = jnp.sum(mask_parts)
    # sum_mask == 0 (fully-censored / all-zero-weight batch) yields NaN,
    # matching the PyTorch 0/0 behaviour; no guard added on purpose.
    return sum_bce / sum_mask * jnp.float32(weight_loss)


def _reference_numpy(pred, risk_label, years_last_followup, weights, weight_loss):
    """Pure-numpy port of the PyTorch forward for verification."""
    pred = np.asarray(pred, dtype=np.float64)
    B, T = pred.shape
    followup = T - 1
    e = np.exp(pred - pred.max(axis=1, keepdims=True))
    p = e / e.sum(axis=1, keepdims=True)
    label = np.asarray(risk_label).copy()
    ylf = np.asarray(years_last_followup)
    label[label > followup] = followup
    y_seq = np.zeros((B, T))
    risk_mask = np.ones((B, T))
    for i in range(B):
        y_seq[i, label[i]] = 1.0
        if label[i] == followup and ylf[i] < followup:
            risk_mask[i, ylf[i] + 1:] = 0.0
    if weights is not None:
        risk_mask = risk_mask * np.asarray(weights, dtype=np.float64).reshape(1, -1)
    log_p = np.maximum(np.log(p), -100.0)
    log_1mp = np.maximum(np.log(1.0 - p), -100.0)
    bce = -(y_seq * log_p + (1.0 - y_seq) * log_1mp) * risk_mask
    return bce.sum() / risk_mask.sum() * weight_loss


if __name__ == "__main__":
    key = jax.random.PRNGKey(0)

    # ---- test 1: tiny batch, per-year weights, horizon-censored sample -------
    B, T = 2, 16
    k1, k2, k3, k4, _ = jax.random.split(key, 5)
    pred = jax.random.normal(k1, (B, T), dtype=jnp.float32)
    risk_label = jnp.array([T - 1, 5], dtype=jnp.int32)
    years_last_followup = jnp.array([7, T - 1], dtype=jnp.int32)
    weights = jnp.linspace(0.5, 1.5, T, dtype=jnp.float32)

    loss1 = jax.block_until_ready(
        risk_bce_loss(pred, risk_label, years_last_followup, weights, 2.0))
    ref1 = _reference_numpy(np.array(pred), np.array(risk_label),
                            np.array(years_last_followup), np.array(weights), 2.0)
    assert np.allclose(float(loss1), ref1, rtol=1e-4, atol=1e-5), (float(loss1), ref1)

    # ---- test 2: larger batch, label clamp, no weights ------------------------
    B2 = 1500
    pred2 = jax.random.normal(k2, (B2, T), dtype=jnp.float32)
    risk_label2 = jax.random.randint(k3, (B2,), 0, T + 4, dtype=jnp.int32)  # exercises clamp
    ylf2 = jax.random.randint(k4, (B2,), 0, T, dtype=jnp.int32)
    ref2 = _reference_numpy(np.array(pred2), np.array(risk_label2),
                            np.array(ylf2), None, 2.0)

    # 2a: default (single-tile) path
    loss2a = jax.block_until_ready(risk_bce_loss(pred2, risk_label2, ylf2, None, 2.0))
    assert np.allclose(float(loss2a), ref2, rtol=1e-4, atol=1e-5), (float(loss2a), ref2)

    # 2b: small tile_lanes to exercise the multi-tile grid + ragged last block
    loss2b = jax.block_until_ready(
        risk_bce_loss(pred2, risk_label2, ylf2, None, 2.0, tile_lanes=512))
    assert np.allclose(float(loss2b), ref2, rtol=1e-4, atol=1e-5), (float(loss2b), ref2)

    # ---- test 3: bf16 logits (halved HBM traffic path), f32 math in-kernel ----
    pred2_bf16 = pred2.astype(jnp.bfloat16)
    loss3 = jax.block_until_ready(
        risk_bce_loss(pred2_bf16, risk_label2, ylf2, None, 2.0))
    ref3 = _reference_numpy(np.array(pred2_bf16.astype(jnp.float32)),
                            np.array(risk_label2), np.array(ylf2), None, 2.0)
    assert np.allclose(float(loss3), ref3, rtol=1e-3, atol=1e-4), (float(loss3), ref3)

    print("KERNEL_OK")
</pallas_src>

<mosaic_0001>
module attributes {stable_mosaic.version = 11 : i64} {
  func.func @_risk_bce_kernel(%arg0: i32, %arg1: memref<16x2xf32, #tpu.memory_space<vmem>>, %arg2: memref<1x2xi32, #tpu.memory_space<vmem>>, %arg3: memref<1x2xi32, #tpu.memory_space<vmem>>, %arg4: memref<16x1xf32, #tpu.memory_space<vmem>>, %arg5: memref<1x2xf32, #tpu.memory_space<vmem>>, %arg6: memref<1x2xf32, #tpu.memory_space<vmem>>) attributes {dimension_semantics = [#tpu.dimension_semantics<parallel>], iteration_bounds = array<i64: 1>, scalar_prefetch = 0 : i64, scratch_operands = 0 : i64, tpu.core_type = #tpu.core_type<tc>, window_params = [{transform_indices = @transform_0, window_bounds = array<i64: 16, 2>}, {transform_indices = @transform_1, window_bounds = array<i64: 1, 2>}, {transform_indices = @transform_2, window_bounds = array<i64: 1, 2>}, {pipeline_mode = #tpu.pipeline_mode<synchronous>, transform_indices = @transform_3, window_bounds = array<i64: 16, 1>}, {transform_indices = @transform_4, window_bounds = array<i64: 1, 2>}, {transform_indices = @transform_5, window_bounds = array<i64: 1, 2>}]} {
    %c0 = arith.constant 0 : index
    %c0_0 = arith.constant 0 : index
    %0 = vector.load %arg1[%c0, %c0_0] : memref<16x2xf32, #tpu.memory_space<vmem>>, vector<16x2xf32>
    %cst = arith.constant dense<0xFF800000> : vector<2xf32>
    %1 = vector.multi_reduction <maximumf>, %0, %cst [0] : vector<16x2xf32> to vector<2xf32>
    %2 = vector.shape_cast %1 : vector<2xf32> to vector<1x2xf32>
    %3 = vector.broadcast %2 : vector<1x2xf32> to vector<16x2xf32>
    %4 = arith.subf %0, %3 : vector<16x2xf32>
    %5 = math.exp %4 : vector<16x2xf32>
    %cst_1 = arith.constant dense<0.000000e+00> : vector<2xf32>
    %6 = vector.multi_reduction <add>, %5, %cst_1 [0] : vector<16x2xf32> to vector<2xf32>
    %7 = vector.shape_cast %6 : vector<2xf32> to vector<1x2xf32>
    %8 = math.log %7 : vector<1x2xf32>
    %c0_2 = arith.constant 0 : index
    %c0_3 = arith.constant 0 : index
    %9 = vector.load %arg2[%c0_2, %c0_3] : memref<1x2xi32, #tpu.memory_space<vmem>>, vector<1x2xi32>
    %c15_i32 = arith.constant 15 : i32
    %10 = vector.broadcast %c15_i32 : i32 to vector<1x2xi32>
    %11 = arith.minsi %9, %10 : vector<1x2xi32>
    %c0_4 = arith.constant 0 : index
    %c0_5 = arith.constant 0 : index
    %12 = vector.load %arg3[%c0_4, %c0_5] : memref<1x2xi32, #tpu.memory_space<vmem>>, vector<1x2xi32>
    %13 = tpu.iota {dimensions = array<i32: 0>} : vector<16x2xi32>
    %14 = tpu.iota {dimensions = array<i32: 1>} : vector<1x2xi32>
    %15 = vector.broadcast %11 : vector<1x2xi32> to vector<16x2xi32>
    %16 = arith.cmpi eq, %13, %15 : vector<16x2xi32>
    %17 = vector.broadcast %7 : vector<1x2xf32> to vector<16x2xf32>
    %18 = arith.subf %17, %5 : vector<16x2xf32>
    %19 = math.log %18 : vector<16x2xf32>
    %20 = arith.select %16, %4, %19 : vector<16x2xi1>, vector<16x2xf32>
    %21 = vector.broadcast %8 : vector<1x2xf32> to vector<16x2xf32>
    %22 = arith.subf %20, %21 : vector<16x2xf32>
    %cst_6 = arith.constant -1.000000e+02 : f32
    %23 = vector.broadcast %cst_6 : f32 to vector<16x2xf32>
    %24 = arith.maximumf %22, %23 : vector<16x2xf32>
    %c15_i32_7 = arith.constant 15 : i32
    %25 = vector.broadcast %c15_i32_7 : i32 to vector<1x2xi32>
    %26 = arith.cmpi eq, %11, %25 : vector<1x2xi32>
    %c15_i32_8 = arith.constant 15 : i32
    %27 = vector.broadcast %c15_i32_8 : i32 to vector<1x2xi32>
    %28 = arith.cmpi slt, %12, %27 : vector<1x2xi32>
    %29 = arith.andi %26, %28 : vector<1x2xi1>
    %c2_i32 = arith.constant 2 : i32
    %30 = arith.muli %arg0, %c2_i32 : i32
    %31 = vector.broadcast %30 : i32 to vector<1x2xi32>
    %32 = arith.addi %31, %14 : vector<1x2xi32>
    %c2_i32_9 = arith.constant 2 : i32
    %33 = vector.broadcast %c2_i32_9 : i32 to vector<1x2xi32>
    %34 = arith.cmpi slt, %32, %33 : vector<1x2xi32>
    %cst_10 = arith.constant dense<true> : vector<1x2xi1>
    %35 = arith.xori %29, %cst_10 : vector<1x2xi1>
    %36 = vector.broadcast %12 : vector<1x2xi32> to vector<16x2xi32>
    %37 = arith.cmpi sle, %13, %36 : vector<16x2xi32>
    %38 = vector.broadcast %35 : vector<1x2xi1> to vector<16x2xi1>
    %39 = arith.ori %38, %37 : vector<16x2xi1>
    %40 = vector.broadcast %34 : vector<1x2xi1> to vector<16x2xi1>
    %41 = arith.andi %40, %39 : vector<16x2xi1>
    %c0_11 = arith.constant 0 : index
    %c0_12 = arith.constant 0 : index
    %42 = vector.load %arg4[%c0_11, %c0_12] : memref<16x1xf32, #tpu.memory_space<vmem>>, vector<16x1xf32>
    %43 = vector.broadcast %42 : vector<16x1xf32> to vector<16x2xf32>
    %44 = arith.mulf %24, %43 : vector<16x2xf32>
    %cst_13 = arith.constant 0.000000e+00 : f32
    %45 = vector.broadcast %cst_13 : f32 to vector<16x2xf32>
    %46 = arith.select %41, %44, %45 : vector<16x2xi1>, vector<16x2xf32>
    %cst_14 = arith.constant dense<0.000000e+00> : vector<2xf32>
    %47 = vector.multi_reduction <add>, %46, %cst_14 [0] : vector<16x2xf32> to vector<2xf32>
    %48 = vector.shape_cast %47 : vector<2xf32> to vector<1x2xf32>
    %cst_15 = arith.constant 0.000000e+00 : f32
    %49 = vector.broadcast %cst_15 : f32 to vector<1x2xf32>
    %50 = arith.subf %49, %48 : vector<1x2xf32>
    %c0_16 = arith.constant 0 : index
    %c0_17 = arith.constant 0 : index
    %51 = vector.load %arg5[%c0_16, %c0_17] : memref<1x2xf32, #tpu.memory_space<vmem>>, vector<1x2xf32>
    tpu.vector_store %arg5[%c0_16, %c0_17], %50 {strides = array<i32>} : memref<1x2xf32, #tpu.memory_space<vmem>>, vector<1x2xf32>,
    %cst_18 = arith.constant 0.000000e+00 : f32
    %52 = vector.shape_cast %42 : vector<16x1xf32> to vector<16x1xf32>
    %53 = vector.broadcast %52 : vector<16x1xf32> to vector<16x2xf32>
    %54 = vector.broadcast %cst_18 : f32 to vector<16x2xf32>
    %55 = arith.select %41, %53, %54 : vector<16x2xi1>, vector<16x2xf32>
    %cst_19 = arith.constant dense<0.000000e+00> : vector<2xf32>
    %56 = vector.multi_reduction <add>, %55, %cst_19 [0] : vector<16x2xf32> to vector<2xf32>
    %57 = vector.shape_cast %56 : vector<2xf32> to vector<1x2xf32>
    %c0_20 = arith.constant 0 : index
    %c0_21 = arith.constant 0 : index
    %58 = vector.load %arg6[%c0_20, %c0_21] : memref<1x2xf32, #tpu.memory_space<vmem>>, vector<1x2xf32>
    tpu.vector_store %arg6[%c0_20, %c0_21], %57 {strides = array<i32>} : memref<1x2xf32, #tpu.memory_space<vmem>>, vector<1x2xf32>,
    return
  }
  func.func @transform_0(%arg0: i32) -> (i32, i32) {
    %c0_i32 = arith.constant 0 : i32
    %c0_i32_0 = arith.constant 0 : i32
    return %c0_i32, %arg0 : i32, i32
  }
  func.func @transform_1(%arg0: i32) -> (i32, i32) {
    %c0_i32 = arith.constant 0 : i32
    %c0_i32_0 = arith.constant 0 : i32
    return %c0_i32, %arg0 : i32, i32
  }
  func.func @transform_2(%arg0: i32) -> (i32, i32) {
    %c0_i32 = arith.constant 0 : i32
    %c0_i32_0 = arith.constant 0 : i32
    return %c0_i32, %arg0 : i32, i32
  }
  func.func @transform_3(%arg0: i32) -> (i32, i32) {
    %c0_i32 = arith.constant 0 : i32
    %c0_i32_0 = arith.constant 0 : i32
    %c0_i32_1 = arith.constant 0 : i32
    return %c0_i32, %c0_i32_0 : i32, i32
  }
  func.func @transform_4(%arg0: i32) -> (i32, i32) {
    %c0_i32 = arith.constant 0 : i32
    %c0_i32_0 = arith.constant 0 : i32
    return %c0_i32, %arg0 : i32, i32
  }
  func.func @transform_5(%arg0: i32) -> (i32, i32) {
    %c0_i32 = arith.constant 0 : i32
    %c0_i32_0 = arith.constant 0 : i32
    return %c0_i32, %arg0 : i32, i32
  }
}

</mosaic_0001>

<bundles_post_ra>
// kernel: tpu_custom_call.1
= control target key start
LH: loop header
LB: loop body
LE: loop exit
PB: predicated region body
PF: predicated region fallthrough
CT: control target
= control target key end

     0   :  { %11 = vsyncpa [#allocation3], 0  ;;  %v230_v0 = vmov 0   ;;  %vm23_vm0 = vcmask 15360   ;;  %s298_s0 = inlined_call_operand.vmem [shape: f32[16,2], index: 0, kind: input, shape index: {}]   ;;  %s299_s1 = inlined_call_operand.vmem [shape: s32[1,2], index: 1, kind: input, shape index: {}]   ;;  %s300_s2 = inlined_call_operand.vmem [shape: s32[1,2], index: 2, kind: input, shape index: {}]   ;;  %s301_s3 = inlined_call_operand.vmem [shape: f32[16,1], index: 3, kind: input, shape index: {}]   ;;  %s302_s4 = inlined_call_operand.hbm [shape: f32[1,2], index: 4, kind: output, shape index: {0}]   ;;  %s303_s5 = inlined_call_operand.hbm [shape: f32[1,2], index: 5, kind: output, shape index: {1}]  }
   0x1   :  { %175 = vset.pattern.permute.xlu0 %v230_v0  ;;  %v103_v1 = vld [vmem:[%s301_s3] sm:$0xff]  ;;  %v22_v3 = vld [vmem:[%s298_s0 + $0x8] sm:$0xff] }
   0x2   :  { %v21_v2 = vld [vmem:[%s298_s0] sm:$0xff]  ;;  %107 = vperm.xlu0 %175, %v103_v1   ;;  %v104_v4 = vld [vmem:[%s301_s3 + $0x8] sm:$0xff] }
   0x3   :  { %12 = vsyncpa [#allocation5], 0  ;;  %v24_v5 = vsel %vm23_vm0, %v21_v2, -inf  ;;  %v25_v6 = vsel %vm23_vm0, %v22_v3, -inf  ;;  %v50_v30 = vld [vmem:[%s299_s1] sm:$0x1]  ;;  %v54_v32 = vlaneseq }
   0x4   :  { %v26_v7 = vmax.f32 %v24_v5, %v25_v6  ;;  %vm51_vm1 = vcmp.lt.s32.totalorder %v50_v30, 15  ;;  %v53_v34 = vld [vmem:[%s300_s2] sm:$0x1]  ;;  %vm231_vm5 = vmmov 1   ;;  %s232_s1 = smov [#allocation4]   ;;  %s233_s28 = smov [#allocation2]  }
   0x5   :  { %v52_v33 = vsel %vm51_vm1, %v50_v30, 15  ;;  %v55_v35 = vshrl.u32 %v54_v32, 7  ;;  %vm78_vm3 = vcmp.lt.s32.totalorder %v53_v34, 15  ;;  %v58_v49 = vand.u32 127, %v54_v32  ;;  %s159_s2 = sshll.u32 %s232_s1, 4  ;;  %s149_s29 = sshll.u32 %s233_s28, 4  ;;  %s160_s2 = int_to_ptr.vmem [resolvable:$true] %s159_s2  ;;  %s150_s29 = int_to_ptr.vmem [resolvable:$true] %s149_s29 }
   0x6   :  { %112 = vperm.xlu0 %175, %v104_v4   ;;  %v27_v8 = vrot.slane %v26_v7, 4  ;;  %vm77_vm2 = vcmp.eq.s32.totalorder %v52_v33, 15  ;;  %s186_s30 = scalar_lea.vmem %s160_s2, 16  ;;  %s190_s6 = scalar_lea.vmem %s160_s2, 32 }
   0x7   :  { %v61_v36 = vsub.s32 0, %v55_v35  ;;  %vm79_vm4 = vmand %vm77_vm2, %vm78_vm3  ;;  %v56_v43 = vadd.s32 8, %v55_v35  ;;  %vm83_vm12 = vcmp.lt.s32.totalorder %v58_v49, 2  ;;  %vm129_vm2 = vcmask 8192   ;;  %p187_p0 = scmp.ne.s32.totalorder %s160_s2, %s186_s30  ;;  %p191_p1 = scmp.lt.s32.totalorder %s160_s2, %s160_s2 }
   0x8   :  { %v28_v9 = vmax.f32 %v26_v7, %v27_v8  ;;  %vm84_vm6 = vmxor %vm79_vm4, %vm231_vm5  ;;  %p192_p2 = scmp.lt.s32.totalorder %s190_s6, %s186_s30 }
   0x9   :  { %v62_v38 = vrot.slane %v52_v33, %v61_v36  ;;  %v91_v42 = vsel %vm84_vm6, 1, %v230_v0  ;;  %v88_v47 = vrot.slane %v53_v34, %v61_v36 }
   0xa   :  { %v29_v10 = vrot.slane %v28_v9, 2  ;;  %v95_v45 = vrot.slane %v91_v42, %v61_v36  ;;  %p193_p3 = por %p192_p2, %p191_p1 }
   0xb   :  { %vm63_vm7 = vcmp.eq.s32.totalorder %v55_v35, %v62_v38  ;;  %vm64_vm8 = vcmp.eq.s32.totalorder %v56_v43, %v62_v38  ;;  %vm89_vm10 = vcmp.le.s32.totalorder %v55_v35, %v88_v47  ;;  %vm90_vm11 = vcmp.le.s32.totalorder %v56_v43, %v88_v47 }
   0xc   :  { %v30_v11 = vmax.f32 %v28_v9, %v29_v10  ;;  %vm96_vm9 = vcmp.eq.s32.totalorder %v95_v45, 1  ;;  %p194_p4 = pnand %p193_p3, %p187_p0 }
   0xd   :  { %vm97_vm13 = vmor %vm96_vm9, %vm89_vm10 }
   0xe   :  { %v31_v12 = vrot.slane %v30_v11, 1  ;;  %vm98_vm14 = vmor %vm96_vm9, %vm90_vm11 }
   0xf   :  { %vm101_vm15 = vmand %vm83_vm12, %vm97_vm13 }
  0x10   :  { %v32_v13 = vmax.f32 %v30_v11, %v31_v12  ;;  %vm102_vm1 = vmand %vm83_vm12, %vm98_vm14 }
  0x12   :  { %v33_v14 = vsub.f32 %v21_v2, %v32_v13  ;;  %v34_v15 = vsub.f32 %v22_v3, %v32_v13 }
  0x14   :  { %v35_v16 = vmul.f32 1.442695, %v33_v14  ;;  %v37_v17 = vmul.f32 1.442695, %v34_v15 }
  0x16   :  { %176 = vpow2.f32 %v35_v16 }
  0x17   :  { %178 = vpow2.f32 %v37_v17 }
  0x23   :  { %v177_v18 = vpop.eup %176 }
  0x24   :  { %v179_v19 = vpop.eup %178  ;;  %v39_v20 = vsel %vm23_vm0, %v177_v18, 0.0 }
  0x25   :  { %v40_v21 = vsel %vm23_vm0, %v179_v19, 0.0 }
  0x26   :  { %v41_v22 = vadd.f32 %v40_v21, %v39_v20 }
  0x28   :  { %v42_v23 = vrot.slane %v41_v22, 4 }
  0x2a   :  { %v43_v24 = vadd.f32 %v42_v23, %v41_v22 }
  0x2c   :  { %v44_v25 = vrot.slane %v43_v24, 2 }
  0x2e   :  { %v45_v26 = vadd.f32 %v44_v25, %v43_v24 }
  0x30   :  { %v46_v27 = vrot.slane %v45_v26, 1 }
  0x32   :  { %v47_v28 = vadd.f32 %v46_v27, %v45_v26 }
  0x34   :  { %v65_v29 = vsub.f32 %v47_v28, %v177_v18  ;;  %v66_v31 = vsub.f32 %v47_v28, %v179_v19 }
  0x36   :  { %180 = vlog2.f32 %v65_v29 }
  0x37   :  { %182 = vlog2.f32 %v47_v28 }
  0x38   :  { %184 = vlog2.f32 %v66_v31 }
  0x43   :  { %v181_v37 = vpop.eup %180 }
  0x44   :  { %v183_v39 = vpop.eup %182  ;;  %v68_v40 = vmul.f32 0.6931472, %v181_v37 }
  0x45   :  { %v185_v41 = vpop.eup %184  ;;  %v49_v44 = vmul.f32 0.6931472, %v183_v39 }
  0x46   :  { %v71_v46 = vsel %vm63_vm7, %v33_v14, %v68_v40  ;;  %v70_v48 = vmul.f32 0.6931472, %v185_v41 }
  0x47   :  { %v73_v50 = vsub.f32 %v71_v46, %v49_v44 }
  0x48   :  { %v72_v51 = vsel %vm64_vm8, %v34_v15, %v70_v48 }
  0x49   :  { %v75_v52 = vmax.f32 %v73_v50, -100.0  ;;  %v74_v53 = vsub.f32 %v72_v51, %v49_v44 }
  0x4b   :  { %v76_v56 = vmax.f32 %v74_v53, -100.0 }
  0x7d   :  { %v108_v54 = vpop.permute.xlu0 %107 }
  0x7e   :  { %v115_v55 = vmul.f32 %v108_v54, %v75_v52  ;;  %v131_v57 = vsel %vm101_vm15, %v108_v54, 0.0 }
  0x7f   :  { %v133_v62 = vsel %vm23_vm0, %v131_v57, 0.0 }
  0x80   :  { %v117_v59 = vsel %vm101_vm15, %v115_v55, 0.0 }
  0x81   :  { %v113_v58 = vpop.permute.xlu0 %112  ;;  %v119_v2 = vsel %vm23_vm0, %v117_v59, 0.0 }
  0x82   :  { %v116_v60 = vmul.f32 %v113_v58, %v76_v56  ;;  %v132_v61 = vsel %vm102_vm1, %v113_v58, 0.0 }
  0x83   :  { %v134_v63 = vsel %vm23_vm0, %v132_v61, 0.0 }
  0x84   :  { %v118_v0 = vsel %vm102_vm1, %v116_v60, 0.0  ;;  %v135_v1 = vadd.f32 %v134_v63, %v133_v62 }
  0x85   :  { %v120_v3 = vsel %vm23_vm0, %v118_v0, 0.0 }
  0x86   :  { %v121_v4 = vadd.f32 %v120_v3, %v119_v2  ;;  %v136_v5 = vrot.slane %v135_v1, 4 }
  0x88   :  { %v122_v6 = vrot.slane %v121_v4, 4  ;;  %v137_v7 = vadd.f32 %v136_v5, %v135_v1 }
  0x8a   :  { %v123_v8 = vadd.f32 %v122_v6, %v121_v4  ;;  %v138_v9 = vrot.slane %v137_v7, 2 }
  0x8c   :  { %v124_v10 = vrot.slane %v123_v8, 2  ;;  %v139_v11 = vadd.f32 %v138_v9, %v137_v7 }
  0x8e   :  { %v125_v12 = vadd.f32 %v124_v10, %v123_v8  ;;  %v140_v13 = vrot.slane %v139_v11, 1 }
  0x90   :  { %v126_v14 = vrot.slane %v125_v12, 1  ;;  %v141_v15 = vadd.f32 %v140_v13, %v139_v11 }
  0x92   :  { %v127_v16 = vadd.f32 %v126_v14, %v125_v12  ;;  %142 = vst.msk [vmem:[#allocation4] sm:$0x1] %vm129_vm2, %v141_v15 }
  0x93   :  { %197 = shalt.err (!%p194_p4)
}
  0x94   :  { %162 = dma.vmem_to_hbm [thread:$0]  %s160_s2, 16, %s303_s5, [#allocation5]   ;;  %v128_v17 = vsub.f32 0.0, %v127_v16 }
  0x95   :  { %s206_s9 = scalar_lea.vmem %s150_s29, 16  ;;  %s210_s10 = scalar_lea.vmem %s150_s29, 32 }
  0x96   :  { %130 = vst.msk [vmem:[#allocation2] sm:$0x1] %vm129_vm2, %v128_v17  ;;  %p207_p5 = scmp.ne.s32.totalorder %s150_s29, %s206_s9  ;;  %p211_p6 = scmp.lt.s32.totalorder %s150_s29, %s150_s29 }
  0x97   :  { %p212_p7 = scmp.lt.s32.totalorder %s210_s10, %s206_s9 }
  0x99   :  { %p213_p8 = por %p212_p7, %p211_p6 }
  0x9b   :  { %p214_p9 = pnand %p213_p8, %p207_p5 }
  0x9d   :  { %217 = shalt.err (!%p214_p9)
}
  0x9e   :  { %152 = dma.vmem_to_hbm [thread:$0]  %s150_s29, 16, %s302_s4, [#allocation3]  }
  0x9f   :  { %226 = dma.done.wait [#allocation3], 16  }
  0xa0   :  { %227 = vsyncadd [#allocation3], 4294967280 }
  0xa1   :  { %228 = dma.done.wait [#allocation5], 16  }
  0xa2   :  { %229 = vsyncadd [#allocation5], 4294967280 }
  0xa3   :  { %169 = vsyncpa [#allocation3], 1 }
  0xa4   :  { %170 = vsyncpa [#allocation5], 1 }

</bundles_post_ra>
